<compile_context>
chip_gen: v5e
topology: v5e:2x2
jax: 0.10.0
libtpu: 0.0.40
codegen_flags: <defaults>
</compile_context>

<pallas_src>
import functools

import jax
import jax.numpy as jnp
from jax.experimental import pallas as pl
from jax.experimental.pallas import tpu as pltpu


# ----------------------------------------------------------------------------
# Pallas kernel
# ----------------------------------------------------------------------------
def _tsm_kernel(x_ref, o_ref, *, fold):
    # Block: (1, T, C, HWt). Loop over the small static time axis; each step
    # reads the needed (C, HWt) slabs from VMEM and stores one lane-dense slab.
    _, T, C, _ = x_ref.shape

    # Channel-group select masks (built once; broadcast over lanes).
    c_idx = jax.lax.broadcasted_iota(jnp.int32, (C, 1), 0)
    in_fold1 = c_idx < fold            # channels shifted toward past  (use x[t+1])
    in_fold2 = c_idx < 2 * fold        # channels shifted toward future (use x[t-1])

    for t in range(T):
        x_t = x_ref[0, t]                                              # (C, HWt)
        x_next = x_ref[0, t + 1] if t + 1 < T else jnp.zeros_like(x_t)
        x_prev = x_ref[0, t - 1] if t > 0 else jnp.zeros_like(x_t)
        out_t = jnp.where(in_fold1, x_next,
                          jnp.where(in_fold2, x_prev, x_t))
        o_ref[0, t] = out_t.astype(o_ref.dtype)


# ----------------------------------------------------------------------------
# Tiling helper: byte-budgeted hw tile (multiple of 128), ragged grid via cdiv.
# ----------------------------------------------------------------------------
def _pick_hw_tile(hw, t, c, itemsize, block_budget_bytes=2 * 1024 * 1024):
    bytes_per_lane = t * c * itemsize
    max_lanes = max(128, (block_budget_bytes // max(1, bytes_per_lane)) // 128 * 128)
    if hw <= max_lanes:
        return hw            # full hw as one block (allowed even if hw % 128 != 0)
    return max_lanes         # multiple of 128; last block is ragged (masked edge)


# ----------------------------------------------------------------------------
# Wrapper
# ----------------------------------------------------------------------------
def tsm_pallas(x, n_segment, fold_div=3):
    nt, c, h, w = x.shape
    assert nt % n_segment == 0, "nt must be divisible by n_segment"
    n_batch = nt // n_segment
    fold = c // fold_div

    # Degenerate case: every channel is a passthrough -> identity, no kernel.
    if fold == 0:
        return x

    hw = h * w
    itemsize = jnp.dtype(x.dtype).itemsize
    hw_tile = _pick_hw_tile(hw, n_segment, c, itemsize)
    num_hw_tiles = pl.cdiv(hw, hw_tile)

    block_bytes = n_segment * c * hw_tile * itemsize
    # in + out double-buffered blocks plus small temps; generous headroom,
    # clamped to v7x's 64 MiB physical VMEM.
    vmem_limit = int(min(64 * 2**20, max(32 * 2**20, 10 * block_bytes)))

    # Free reshape: contiguous trailing dims, no HBM relayout.
    x4 = x.reshape(n_batch, n_segment, c, hw)

    out = pl.pallas_call(
        functools.partial(_tsm_kernel, fold=fold),
        out_shape=jax.ShapeDtypeStruct((n_batch, n_segment, c, hw), x.dtype),
        # hw-tile axis first (most steps) so it shards across cores on v7x.
        grid=(num_hw_tiles, n_batch),
        in_specs=[
            pl.BlockSpec((1, n_segment, c, hw_tile), lambda j, b: (b, 0, 0, j)),
        ],
        out_specs=pl.BlockSpec((1, n_segment, c, hw_tile), lambda j, b: (b, 0, 0, j)),
        compiler_params=pltpu.CompilerParams(
            dimension_semantics=("parallel", "parallel"),
            vmem_limit_bytes=vmem_limit),
        cost_estimate=pl.CostEstimate(
            flops=0,
            transcendentals=0,
            bytes_accessed=2 * nt * c * hw * itemsize),
    )(x4)
    return out.reshape(nt, c, h, w)


tsm_forward = jax.jit(tsm_pallas, static_argnums=(1, 2))


# ----------------------------------------------------------------------------
# Pure-JAX reference (mirrors the PyTorch module exactly)
# ----------------------------------------------------------------------------
def tsm_ref(x, n_segment, fold_div=3):
    nt, c, h, w = x.shape
    n = nt // n_segment
    xr = x.reshape(n, n_segment, c, h, w)
    fold = c // fold_div
    out = jnp.zeros_like(xr)
    out = out.at[:, :-1, :fold].set(xr[:, 1:, :fold])
    out = out.at[:, 1:, fold:2 * fold].set(xr[:, :-1, fold:2 * fold])
    out = out.at[:, :, 2 * fold:].set(xr[:, :, 2 * fold:])
    return out.reshape(nt, c, h, w)


# ----------------------------------------------------------------------------
if __name__ == "__main__":
    key = jax.random.PRNGKey(0)
    k1, k2 = jax.random.split(key)

    # Case 1: small shape (primary check).
    n_segment, n_batch, c, h, w = 4, 2, 4, 16, 16          # fold = 4 // 3 = 1
    x1 = jax.random.normal(k1, (n_segment * n_batch, c, h, w), jnp.float32)
    out1 = jax.block_until_ready(tsm_forward(x1, n_segment, 3))
    ref1 = tsm_ref(x1, n_segment, 3)
    assert out1.shape == x1.shape
    assert bool(jnp.all(jnp.isfinite(out1)))
    assert bool(jnp.allclose(out1, ref1)), float(jnp.max(jnp.abs(out1 - ref1)))

    # Case 2: TS-CAN-like feature map (non-multiple-of-128 hw -> ragged grid,
    # multiple hw tiles per clip).
    n_segment2, n_batch2, c2, h2, w2 = 10, 1, 64, 36, 36   # hw = 1296
    x2 = jax.random.normal(k2, (n_segment2 * n_batch2, c2, h2, w2), jnp.float32)
    out2 = jax.block_until_ready(tsm_forward(x2, n_segment2, 3))
    ref2 = tsm_ref(x2, n_segment2, 3)
    assert bool(jnp.allclose(out2, ref2)), float(jnp.max(jnp.abs(out2 - ref2)))

    # Case 3: fold == 0 short-circuit (c < fold_div -> identity, no kernel).
    x3 = jax.random.normal(k1, (n_segment * n_batch, 2, h, w), jnp.float32)
    out3 = jax.block_until_ready(tsm_forward(x3, n_segment, 3))
    assert bool(jnp.allclose(out3, tsm_ref(x3, n_segment, 3)))

    print("KERNEL_OK")
</pallas_src>

<mosaic_0001>
module attributes {stable_mosaic.version = 11 : i64} {
  func.func @_tsm_kernel(%arg0: i32, %arg1: i32, %arg2: memref<1x4x4x256xf32, #tpu.memory_space<vmem>>, %arg3: memref<1x4x4x256xf32, #tpu.memory_space<vmem>>) attributes {dimension_semantics = [#tpu.dimension_semantics<parallel>, #tpu.dimension_semantics<parallel>], iteration_bounds = array<i64: 1, 2>, scalar_prefetch = 0 : i64, scratch_operands = 0 : i64, tpu.core_type = #tpu.core_type<tc>, window_params = [{transform_indices = @transform_0, window_bounds = array<i64: 1, 4, 4, 256>}, {transform_indices = @transform_1, window_bounds = array<i64: 1, 4, 4, 256>}]} {
    %0 = tpu.iota {dimensions = array<i32: 0>} : vector<4x1xi32>
    %c1_i32 = arith.constant 1 : i32
    %1 = vector.broadcast %c1_i32 : i32 to vector<4x1xi32>
    %2 = arith.cmpi slt, %0, %1 : vector<4x1xi32>
    %c2_i32 = arith.constant 2 : i32
    %3 = vector.broadcast %c2_i32 : i32 to vector<4x1xi32>
    %4 = arith.cmpi slt, %0, %3 : vector<4x1xi32>
    %c0 = arith.constant 0 : index
    %c0_0 = arith.constant 0 : index
    %c0_1 = arith.constant 0 : index
    %c0_2 = arith.constant 0 : index
    %5 = vector.load %arg2[%c0, %c0_0, %c0_1, %c0_2] : memref<1x4x4x256xf32, #tpu.memory_space<vmem>>, vector<1x1x4x256xf32>
    %6 = vector.shape_cast %5 : vector<1x1x4x256xf32> to vector<4x256xf32>
    %c0_3 = arith.constant 0 : index
    %c1 = arith.constant 1 : index
    %c0_4 = arith.constant 0 : index
    %c0_5 = arith.constant 0 : index
    %7 = vector.load %arg2[%c0_3, %c1, %c0_4, %c0_5] : memref<1x4x4x256xf32, #tpu.memory_space<vmem>>, vector<1x1x4x256xf32>
    %8 = vector.shape_cast %7 : vector<1x1x4x256xf32> to vector<4x256xf32>
    %cst = arith.constant 0.000000e+00 : f32
    %9 = vector.broadcast %cst : f32 to vector<4x256xf32>
    %10 = vector.shape_cast %4 : vector<4x1xi1> to vector<4x1xi1>
    %11 = vector.broadcast %10 : vector<4x1xi1> to vector<4x256xi1>
    %12 = arith.select %11, %9, %6 : vector<4x256xi1>, vector<4x256xf32>
    %13 = vector.shape_cast %2 : vector<4x1xi1> to vector<4x1xi1>
    %14 = vector.broadcast %13 : vector<4x1xi1> to vector<4x256xi1>
    %15 = arith.select %14, %8, %12 : vector<4x256xi1>, vector<4x256xf32>
    %c0_6 = arith.constant 0 : index
    %c0_7 = arith.constant 0 : index
    %c0_8 = arith.constant 0 : index
    %c0_9 = arith.constant 0 : index
    %16 = vector.load %arg3[%c0_6, %c0_7, %c0_8, %c0_9] : memref<1x4x4x256xf32, #tpu.memory_space<vmem>>, vector<1x1x4x256xf32>
    %17 = vector.shape_cast %16 : vector<1x1x4x256xf32> to vector<4x256xf32>
    %18 = vector.shape_cast %15 : vector<4x256xf32> to vector<1x1x4x256xf32>
    tpu.vector_store %arg3[%c0_6, %c0_7, %c0_8, %c0_9], %18 {strides = array<i32>} : memref<1x4x4x256xf32, #tpu.memory_space<vmem>>, vector<1x1x4x256xf32>,
    %c0_10 = arith.constant 0 : index
    %c1_11 = arith.constant 1 : index
    %c0_12 = arith.constant 0 : index
    %c0_13 = arith.constant 0 : index
    %19 = vector.load %arg2[%c0_10, %c1_11, %c0_12, %c0_13] : memref<1x4x4x256xf32, #tpu.memory_space<vmem>>, vector<1x1x4x256xf32>
    %20 = vector.shape_cast %19 : vector<1x1x4x256xf32> to vector<4x256xf32>
    %c0_14 = arith.constant 0 : index
    %c2 = arith.constant 2 : index
    %c0_15 = arith.constant 0 : index
    %c0_16 = arith.constant 0 : index
    %21 = vector.load %arg2[%c0_14, %c2, %c0_15, %c0_16] : memref<1x4x4x256xf32, #tpu.memory_space<vmem>>, vector<1x1x4x256xf32>
    %22 = vector.shape_cast %21 : vector<1x1x4x256xf32> to vector<4x256xf32>
    %c0_17 = arith.constant 0 : index
    %c0_18 = arith.constant 0 : index
    %c0_19 = arith.constant 0 : index
    %c0_20 = arith.constant 0 : index
    %23 = vector.load %arg2[%c0_17, %c0_18, %c0_19, %c0_20] : memref<1x4x4x256xf32, #tpu.memory_space<vmem>>, vector<1x1x4x256xf32>
    %24 = vector.shape_cast %23 : vector<1x1x4x256xf32> to vector<4x256xf32>
    %25 = vector.shape_cast %4 : vector<4x1xi1> to vector<4x1xi1>
    %26 = vector.broadcast %25 : vector<4x1xi1> to vector<4x256xi1>
    %27 = arith.select %26, %24, %20 : vector<4x256xi1>, vector<4x256xf32>
    %28 = vector.shape_cast %2 : vector<4x1xi1> to vector<4x1xi1>
    %29 = vector.broadcast %28 : vector<4x1xi1> to vector<4x256xi1>
    %30 = arith.select %29, %22, %27 : vector<4x256xi1>, vector<4x256xf32>
    %c0_21 = arith.constant 0 : index
    %c1_22 = arith.constant 1 : index
    %c0_23 = arith.constant 0 : index
    %c0_24 = arith.constant 0 : index
    %31 = vector.load %arg3[%c0_21, %c1_22, %c0_23, %c0_24] : memref<1x4x4x256xf32, #tpu.memory_space<vmem>>, vector<1x1x4x256xf32>
    %32 = vector.shape_cast %31 : vector<1x1x4x256xf32> to vector<4x256xf32>
    %33 = vector.shape_cast %30 : vector<4x256xf32> to vector<1x1x4x256xf32>
    tpu.vector_store %arg3[%c0_21, %c1_22, %c0_23, %c0_24], %33 {strides = array<i32>} : memref<1x4x4x256xf32, #tpu.memory_space<vmem>>, vector<1x1x4x256xf32>,
    %c0_25 = arith.constant 0 : index
    %c2_26 = arith.constant 2 : index
    %c0_27 = arith.constant 0 : index
    %c0_28 = arith.constant 0 : index
    %34 = vector.load %arg2[%c0_25, %c2_26, %c0_27, %c0_28] : memref<1x4x4x256xf32, #tpu.memory_space<vmem>>, vector<1x1x4x256xf32>
    %35 = vector.shape_cast %34 : vector<1x1x4x256xf32> to vector<4x256xf32>
    %c0_29 = arith.constant 0 : index
    %c3 = arith.constant 3 : index
    %c0_30 = arith.constant 0 : index
    %c0_31 = arith.constant 0 : index
    %36 = vector.load %arg2[%c0_29, %c3, %c0_30, %c0_31] : memref<1x4x4x256xf32, #tpu.memory_space<vmem>>, vector<1x1x4x256xf32>
    %37 = vector.shape_cast %36 : vector<1x1x4x256xf32> to vector<4x256xf32>
    %c0_32 = arith.constant 0 : index
    %c1_33 = arith.constant 1 : index
    %c0_34 = arith.constant 0 : index
    %c0_35 = arith.constant 0 : index
    %38 = vector.load %arg2[%c0_32, %c1_33, %c0_34, %c0_35] : memref<1x4x4x256xf32, #tpu.memory_space<vmem>>, vector<1x1x4x256xf32>
    %39 = vector.shape_cast %38 : vector<1x1x4x256xf32> to vector<4x256xf32>
    %40 = vector.shape_cast %4 : vector<4x1xi1> to vector<4x1xi1>
    %41 = vector.broadcast %40 : vector<4x1xi1> to vector<4x256xi1>
    %42 = arith.select %41, %39, %35 : vector<4x256xi1>, vector<4x256xf32>
    %43 = vector.shape_cast %2 : vector<4x1xi1> to vector<4x1xi1>
    %44 = vector.broadcast %43 : vector<4x1xi1> to vector<4x256xi1>
    %45 = arith.select %44, %37, %42 : vector<4x256xi1>, vector<4x256xf32>
    %c0_36 = arith.constant 0 : index
    %c2_37 = arith.constant 2 : index
    %c0_38 = arith.constant 0 : index
    %c0_39 = arith.constant 0 : index
    %46 = vector.load %arg3[%c0_36, %c2_37, %c0_38, %c0_39] : memref<1x4x4x256xf32, #tpu.memory_space<vmem>>, vector<1x1x4x256xf32>
    %47 = vector.shape_cast %46 : vector<1x1x4x256xf32> to vector<4x256xf32>
    %48 = vector.shape_cast %45 : vector<4x256xf32> to vector<1x1x4x256xf32>
    tpu.vector_store %arg3[%c0_36, %c2_37, %c0_38, %c0_39], %48 {strides = array<i32>} : memref<1x4x4x256xf32, #tpu.memory_space<vmem>>, vector<1x1x4x256xf32>,
    %c0_40 = arith.constant 0 : index
    %c3_41 = arith.constant 3 : index
    %c0_42 = arith.constant 0 : index
    %c0_43 = arith.constant 0 : index
    %49 = vector.load %arg2[%c0_40, %c3_41, %c0_42, %c0_43] : memref<1x4x4x256xf32, #tpu.memory_space<vmem>>, vector<1x1x4x256xf32>
    %50 = vector.shape_cast %49 : vector<1x1x4x256xf32> to vector<4x256xf32>
    %cst_44 = arith.constant 0.000000e+00 : f32
    %51 = vector.broadcast %cst_44 : f32 to vector<4x256xf32>
    %c0_45 = arith.constant 0 : index
    %c2_46 = arith.constant 2 : index
    %c0_47 = arith.constant 0 : index
    %c0_48 = arith.constant 0 : index
    %52 = vector.load %arg2[%c0_45, %c2_46, %c0_47, %c0_48] : memref<1x4x4x256xf32, #tpu.memory_space<vmem>>, vector<1x1x4x256xf32>
    %53 = vector.shape_cast %52 : vector<1x1x4x256xf32> to vector<4x256xf32>
    %54 = vector.shape_cast %4 : vector<4x1xi1> to vector<4x1xi1>
    %55 = vector.broadcast %54 : vector<4x1xi1> to vector<4x256xi1>
    %56 = arith.select %55, %53, %50 : vector<4x256xi1>, vector<4x256xf32>
    %57 = vector.shape_cast %2 : vector<4x1xi1> to vector<4x1xi1>
    %58 = vector.broadcast %57 : vector<4x1xi1> to vector<4x256xi1>
    %59 = arith.select %58, %51, %56 : vector<4x256xi1>, vector<4x256xf32>
    %c0_49 = arith.constant 0 : index
    %c3_50 = arith.constant 3 : index
    %c0_51 = arith.constant 0 : index
    %c0_52 = arith.constant 0 : index
    %60 = vector.load %arg3[%c0_49, %c3_50, %c0_51, %c0_52] : memref<1x4x4x256xf32, #tpu.memory_space<vmem>>, vector<1x1x4x256xf32>
    %61 = vector.shape_cast %60 : vector<1x1x4x256xf32> to vector<4x256xf32>
    %62 = vector.shape_cast %59 : vector<4x256xf32> to vector<1x1x4x256xf32>
    tpu.vector_store %arg3[%c0_49, %c3_50, %c0_51, %c0_52], %62 {strides = array<i32>} : memref<1x4x4x256xf32, #tpu.memory_space<vmem>>, vector<1x1x4x256xf32>,
    return
  }
  func.func @transform_0(%arg0: i32, %arg1: i32) -> (i32, i32, i32, i32) {
    %c0_i32 = arith.constant 0 : i32
    %c0_i32_0 = arith.constant 0 : i32
    %c0_i32_1 = arith.constant 0 : i32
    return %arg1, %c0_i32, %c0_i32_0, %arg0 : i32, i32, i32, i32
  }
  func.func @transform_1(%arg0: i32, %arg1: i32) -> (i32, i32, i32, i32) {
    %c0_i32 = arith.constant 0 : i32
    %c0_i32_0 = arith.constant 0 : i32
    %c0_i32_1 = arith.constant 0 : i32
    return %arg1, %c0_i32, %c0_i32_0, %arg0 : i32, i32, i32, i32
  }
}

</mosaic_0001>

<bundles_post_ra>
// kernel: tsm_pallas.1
= control target key start
LH: loop header
LB: loop body
LE: loop exit
PB: predicated region body
PF: predicated region fallthrough
CT: control target
= control target key end

     0   :  { %s450_s6 = smov 0   ;;  %s452_s7 = smov 0   ;;  %s515_s0 = inlined_call_operand.vmem [shape: f32[2,4,4,256], index: 0, kind: input, shape index: {}]   ;;  %s516_s1 = inlined_call_operand.vmem [shape: f32[2,4,4,256], index: 1, kind: output, shape index: {}]  }
   0x1   :  { %s454_s8 = smov 0  }
   0x2 LB: > { %s20_s9 = sadd.s32 1, %s434_s7  ;;  %p372_p0 = scmp.ge.s32.totalorder %s438_s8, 1  ;;  %s438_s8 = sphi %s454_s8, %s11_s8   ;;  %s434_s7 = sphi %s452_s7, %s518_s7   ;;  %s430_s6 = sphi %s450_s6, %s517_s6  }
   0x3   : > { %p21_p1 = scmp.ge.s32.totalorder %s20_s9, 2  ;;  %p108_p2 = scmp.lt.s32.totalorder %s438_s8, 3 }
   0x5   : > { %s520_s9 = smov (%p21_p1, %s20_s9), 0  ;;  %p109_p3 = pnand %p372_p0, %p108_p2 }
   0x6   : > { %p137_p4 = scmp.lt.s32.totalorder (!%p109_p3), %s430_s6, 1 }
   0x7   : > { %112 = sbr.rel (%p109_p3) target bundleno = 102 (0x66), region = 24 }
   0xc   : > { %s522_s6 = smov (!%p137_p4, %s430_s6), 1  ;;  %v156_v1 = vlaneseq  ;;  %vm186_vm2 = vcmask 1043456  }
   0xd   : > { %s390_s10 = sshll.u32 %s522_s6, 5 }
   0xe   : > { %s471_s13 = scalar_lea.vmem %s515_s0, %s390_s10  ;;  %v157_v3 = vshrl.u32 %v156_v1, 7  ;;  %s480_s16 = scalar_lea.vmem %s516_s1, %s390_s10 }
   0xf   : > { %v160_v0 = vld [vmem:[%s471_s13] sm:$0xff]  ;;  %v377_v2 = vld [vmem:[%s471_s13 + $0x8] sm:$0xff]  ;;  %v386_v16 = vld [vmem:[%s471_s13 + $0x10] sm:$0xff] }
  0x10   : > { %166 = vst [vmem:[#allocation1] ss:$2 sm:$0xff] %v160_v0  ;;  %vm159_vm0 = vcmp.lt.s32.totalorder %v157_v3, 2  ;;  %vm158_vm1 = vcmp.lt.s32.totalorder %v157_v3, 1  ;;  %v382_v29 = vld [vmem:[%s471_s13 + $0x18] sm:$0xff] }
  0x17   : > { %v167_v4 = vld.sshfl [vmem:[#allocation1] sm:$0xff pattern:$0x75316420]  ;;  %v168_v5 = vld.sshfl [vmem:[#allocation1 + $0x8] sm:$0xff pattern:$0x75316420] }
  0x18   : > { %176 = vst [vmem:[#allocation1] ss:$2 sm:$0xff] %v377_v2  ;;  %v172_v6 = vsel %vm159_vm0, 0.0, %v168_v5  ;;  %v171_v10 = vsel %vm159_vm0, 0.0, %v167_v4 }
  0x1f   : > { %v177_v7 = vld.sshfl [vmem:[#allocation1] sm:$0xff pattern:$0x75316420]  ;;  %v178_v8 = vld.sshfl [vmem:[#allocation1 + $0x8] sm:$0xff pattern:$0x75316420] }
  0x20   : > { %195 = vst [vmem:[#allocation1] ss:$2 sm:$0xff] %v160_v0  ;;  %v182_v9 = vsel %vm158_vm1, %v178_v8, %v172_v6  ;;  %v181_v12 = vsel %vm158_vm1, %v177_v7, %v171_v10 }
  0x21   : > { %v185_v11 = vrot.slane %v182_v9, 4 }
  0x23   : > { %v187_v13 = vsel %vm186_vm2, %v181_v12, %v185_v11 }
  0x24   : > { %189 = vst [vmem:[%s480_s16] sm:$0xff] %v187_v13 }
  0x27   : > { %v196_v14 = vld.sshfl [vmem:[#allocation1] sm:$0xff pattern:$0x75316420]  ;;  %v197_v15 = vld.sshfl [vmem:[#allocation1 + $0x8] sm:$0xff pattern:$0x75316420] }
  0x28   : > { %201 = vst [vmem:[#allocation1] ss:$2 sm:$0xff] %v377_v2 }
  0x2f   : > { %v202_v17 = vld.sshfl [vmem:[#allocation1] sm:$0xff pattern:$0x75316420]  ;;  %v203_v18 = vld.sshfl [vmem:[#allocation1 + $0x8] sm:$0xff pattern:$0x75316420] }
  0x30   : > { %209 = vst [vmem:[#allocation1] ss:$2 sm:$0xff] %v386_v16  ;;  %v207_v21 = vsel %vm159_vm0, %v197_v15, %v203_v18  ;;  %v206_v23 = vsel %vm159_vm0, %v196_v14, %v202_v17 }
  0x37   : > { %v210_v19 = vld.sshfl [vmem:[#allocation1] sm:$0xff pattern:$0x75316420]  ;;  %v211_v20 = vld.sshfl [vmem:[#allocation1 + $0x8] sm:$0xff pattern:$0x75316420] }
  0x38   : > { %228 = vst [vmem:[#allocation1] ss:$2 sm:$0xff] %v377_v2  ;;  %v215_v22 = vsel %vm158_vm1, %v211_v20, %v207_v21  ;;  %v214_v25 = vsel %vm158_vm1, %v210_v19, %v206_v23 }
  0x39   : > { %v218_v24 = vrot.slane %v215_v22, 4 }
  0x3b   : > { %v219_v26 = vsel %vm186_vm2, %v214_v25, %v218_v24 }
  0x3c   : > { %380 = vst [vmem:[%s480_s16 + $0x8] sm:$0xff] %v219_v26 }
  0x3f   : > { %v229_v27 = vld.sshfl [vmem:[#allocation1] sm:$0xff pattern:$0x75316420]  ;;  %v230_v28 = vld.sshfl [vmem:[#allocation1 + $0x8] sm:$0xff pattern:$0x75316420] }
  0x40   : > { %234 = vst [vmem:[#allocation1] ss:$2 sm:$0xff] %v386_v16 }
  0x47   : > { %v235_v30 = vld.sshfl [vmem:[#allocation1] sm:$0xff pattern:$0x75316420]  ;;  %v236_v31 = vld.sshfl [vmem:[#allocation1 + $0x8] sm:$0xff pattern:$0x75316420] }
  0x48   : > { %242 = vst [vmem:[#allocation1] ss:$2 sm:$0xff] %v382_v29  ;;  %v240_v34 = vsel %vm159_vm0, %v230_v28, %v236_v31  ;;  %v239_v36 = vsel %vm159_vm0, %v229_v27, %v235_v30 }
  0x4f   : > { %v243_v32 = vld.sshfl [vmem:[#allocation1] sm:$0xff pattern:$0x75316420]  ;;  %v244_v33 = vld.sshfl [vmem:[#allocation1 + $0x8] sm:$0xff pattern:$0x75316420] }
  0x50   : > { %259 = vst [vmem:[#allocation1] ss:$2 sm:$0xff] %v386_v16  ;;  %v248_v35 = vsel %vm158_vm1, %v244_v33, %v240_v34  ;;  %v247_v38 = vsel %vm158_vm1, %v243_v32, %v239_v36 }
  0x51   : > { %v251_v37 = vrot.slane %v248_v35, 4 }
  0x53   : > { %v252_v39 = vsel %vm186_vm2, %v247_v38, %v251_v37 }
  0x54   : > { %384 = vst [vmem:[%s480_s16 + $0x10] sm:$0xff] %v252_v39 }
  0x57   : > { %v260_v40 = vld.sshfl [vmem:[#allocation1] sm:$0xff pattern:$0x75316420]  ;;  %v261_v41 = vld.sshfl [vmem:[#allocation1 + $0x8] sm:$0xff pattern:$0x75316420] }
  0x58   : > { %265 = vst [vmem:[#allocation1] ss:$2 sm:$0xff] %v382_v29 }
  0x5f   : > { %v266_v42 = vld.sshfl [vmem:[#allocation1] sm:$0xff pattern:$0x75316420]  ;;  %v267_v43 = vld.sshfl [vmem:[#allocation1 + $0x8] sm:$0xff pattern:$0x75316420] }
  0x60   : > { %v270_v44 = vsel %vm159_vm0, %v260_v40, %v266_v42  ;;  %v271_v45 = vsel %vm159_vm0, %v261_v41, %v267_v43 }
  0x61   : > { %v273_v46 = vsel %vm158_vm1, 0.0, %v271_v45  ;;  %v272_v48 = vsel %vm158_vm1, 0.0, %v270_v44 }
  0x62   : > { %v276_v47 = vrot.slane %v273_v46, 4 }
  0x64   : > { %v277_v49 = vsel %vm186_vm2, %v272_v48, %v276_v47 }
  0x65   : > { %387 = vst [vmem:[%s480_s16 + $0x18] sm:$0xff] %v277_v49 }
  0x66 PF: > { %s11_s8 = sadd.s32 1, %s438_s8   ;;  %s517_s6 = smov %s434_s7 }
  0x67   : > { %p8_p5 = scmp.ge.s32.totalorder %s11_s8, 4   ;;  %s518_s7 = smov %s520_s9 }
  0x69   :  { %10 = sbr.rel (!%p8_p5) target bundleno = 2 (0x2), region = 60 }

</bundles_post_ra>
